<compile_context>
chip_gen: v5e
topology: v5e:2x2
jax: 0.10.0
libtpu: 0.0.40
codegen_flags: <defaults>
</compile_context>

<pallas_src>
import functools

import jax
import jax.numpy as jnp
from jax import lax
from jax.experimental import pallas as pl
from jax.experimental.pallas import tpu as pltpu


def _num_tensorcores_per_chip():
    """2 for multi-TensorCore chips (v4 / v5p / v7-class), 1 for v5e / v6e."""
    try:
        kind = jax.devices()[0].device_kind.lower()
    except Exception:  # pragma: no cover - defensive
        return 1
    if "lite" in kind or "v5e" in kind or "v6e" in kind:
        return 1
    if "v7" in kind or "v5p" in kind or "v4" in kind:
        return 2
    return 1


# ---------------------------------------------------------------------------
# Fast path: whole problem fits comfortably in VMEM -> one grid step,
# full-array blocks (sidesteps the (8,128) rule and all padding).
# ---------------------------------------------------------------------------
def _l1_small_kernel(pred_ref, label_ref, abs_out_ref, cnt_out_ref):
    preds = pred_ref[...].astype(jnp.float32)
    labels = label_ref[...].astype(jnp.float32)
    mask = (labels != -1.0).astype(jnp.float32)
    # |p - l| * m is IEEE-identical (incl. NaN/Inf propagation) to
    # |p*m - l*m| from the torch reference, one fewer VALU op per element.
    diff = jnp.abs(preds - labels) * mask
    abs_out_ref[0, 0] = jnp.sum(diff)
    cnt_out_ref[0, 0] = jnp.sum(mask)


# ---------------------------------------------------------------------------
# Tiled path: grid = (num_cores, row_blocks_per_core, col_blocks).
# Interior tiles: unmasked accumulate. Boundary / clamped-duplicate tiles:
# explicit in-bounds mask (zeroes unspecified buffer contents, even NaN/Inf).
# Each tile is pre-reduced to (ar, tc) before accumulating into small VMEM
# scratch; the single cross-lane reduce + SMEM store happens once per core.
# ---------------------------------------------------------------------------
def _l1_tiled_kernel(pred_ref, label_ref, abs_out_ref, cnt_out_ref,
                     sum_acc, cnt_acc, *, n, m, tr, tc, ar,
                     row_blocks_per_core):
    c = pl.program_id(0)
    i = pl.program_id(1)
    j = pl.program_id(2)

    @pl.when((i == 0) & (j == 0))
    def _():
        sum_acc[...] = jnp.zeros_like(sum_acc)
        cnt_acc[...] = jnp.zeros_like(cnt_acc)

    preds = pred_ref[...].astype(jnp.float32)
    labels = label_ref[...].astype(jnp.float32)

    row_base = (c * row_blocks_per_core + i) * tr
    col_base = j * tc
    is_boundary = (row_base + tr > n) | (col_base + tc > m)

    def _reduce_rows(x):
        if ar == tr:
            return x
        # Pure vreg-vs-vreg adds (no cross-lane/XLU work).
        return x.reshape(tr // ar, ar, tc).sum(axis=0)

    @pl.when(jnp.logical_not(is_boundary))
    def _():  # interior tiles: the overwhelming majority -> no mask machinery
        mask = (labels != -1.0).astype(jnp.float32)
        diff = jnp.abs(preds - labels) * mask
        sum_acc[...] += _reduce_rows(diff)
        cnt_acc[...] += _reduce_rows(mask)

    @pl.when(is_boundary)
    def _():  # ragged boundary tiles and clamped duplicate row-blocks
        rows = row_base + lax.broadcasted_iota(jnp.int32, (tr, tc), 0)
        cols = col_base + lax.broadcasted_iota(jnp.int32, (tr, tc), 1)
        in_bounds = (rows < n) & (cols < m)
        lm = (labels != -1.0).astype(jnp.float32)
        # The explicit selects force out-of-bounds garbage (incl. NaN/Inf)
        # to contribute exactly 0; in-bounds entries keep torch semantics.
        mask = jnp.where(in_bounds, lm, 0.0)
        diff = jnp.where(in_bounds, jnp.abs(preds - labels) * lm, 0.0)
        sum_acc[...] += _reduce_rows(diff)
        cnt_acc[...] += _reduce_rows(mask)

    @pl.when((i == pl.num_programs(1) - 1) & (j == pl.num_programs(2) - 1))
    def _():
        abs_out_ref[0, 0] = jnp.sum(sum_acc[...])
        cnt_out_ref[0, 0] = jnp.sum(cnt_acc[...])


@functools.partial(
    jax.jit, static_argnames=("row_tile", "col_tile", "small_path_elems"))
def l1_distance_loss(predictions, label_matrix, *, row_tile=None, col_tile=None,
                     small_path_elems=128 * 1024):
    """Masked L1 loss over a distance matrix; entries with label == -1 ignored."""
    n, m = predictions.shape
    assert label_matrix.shape == (n, m)

    itemsize = (jnp.dtype(predictions.dtype).itemsize
                + jnp.dtype(label_matrix.dtype).itemsize)
    cost = pl.CostEstimate(flops=6 * n * m, transcendentals=0,
                           bytes_accessed=n * m * itemsize + 16)

    use_small = (n * m) <= small_path_elems and row_tile is None and col_tile is None

    if use_small:
        abs_sum, cnt = pl.pallas_call(
            _l1_small_kernel,
            out_shape=(
                jax.ShapeDtypeStruct((1, 1), jnp.float32),
                jax.ShapeDtypeStruct((1, 1), jnp.float32),
            ),
            grid_spec=pltpu.PrefetchScalarGridSpec(
                num_scalar_prefetch=0,
                grid=(1,),
                in_specs=[
                    pl.BlockSpec((n, m), lambda i: (0, 0)),
                    pl.BlockSpec((n, m), lambda i: (0, 0)),
                ],
                out_specs=(
                    pl.BlockSpec((1, 1), lambda i: (0, 0), memory_space=pltpu.SMEM),
                    pl.BlockSpec((1, 1), lambda i: (0, 0), memory_space=pltpu.SMEM),
                ),
            ),
            compiler_params=pltpu.CompilerParams(
                dimension_semantics=("arbitrary",)),
            cost_estimate=cost,
        )(predictions, label_matrix)
        abs_total = abs_sum[0, 0]
        cnt_total = cnt[0, 0]
    else:
        num_tc = _num_tensorcores_per_chip()

        # Tile sizes: full dim when small (always legal), else (8,128)-aligned.
        # (512,1024) f32 = 8 MiB of double-buffered inputs (fits v5e's 16 MiB
        # scoped default); (512,2048) on 2-TC chips (32 MiB scoped default).
        default_tc = 2048 if num_tc >= 2 else 1024
        tr = row_tile if row_tile is not None else min(n, 512)
        tc = col_tile if col_tile is not None else min(m, default_tc)
        tr = min(tr, n)
        tc = min(tc, m)
        if tr < n and tr % 8:
            raise ValueError("row_tile must be a multiple of 8 when < num rows")
        if tc < m and tc % 128:
            raise ValueError("col_tile must be a multiple of 128 when < num cols")

        nr = -(-n // tr)
        nc = -(-m // tc)

        # Only split the row-block range when the chip actually has >1
        # TensorCore; on 1-TC chips the axis is size 1 (no duplicate DMAs).
        num_cores = min(num_tc, nr)
        if num_cores > 1 and nr % num_cores and tr % 8 == 0:
            # Nudge the row tile down (multiples of 8) so nr splits evenly,
            # avoiding a wasted clamped duplicate row-strip DMA on one core.
            cand = tr - 8
            while cand >= max(8, tr // 2):
                if (-(-n // cand)) % num_cores == 0:
                    tr = cand
                    nr = -(-n // cand)
                    break
                cand -= 8
        rb_per_core = -(-nr // num_cores)

        # Partial-accumulator row count: 8 when the tile is sublane-aligned,
        # else fall back to a full-tile accumulator (rare: tr == n, n % 8 != 0).
        ar = 8 if tr % 8 == 0 else tr

        def in_map(c, i, j):
            rb = jnp.minimum(c * rb_per_core + i, nr - 1)
            return (rb, j)

        kernel = functools.partial(
            _l1_tiled_kernel, n=n, m=m, tr=tr, tc=tc, ar=ar,
            row_blocks_per_core=rb_per_core)

        abs_parts, cnt_parts = pl.pallas_call(
            kernel,
            out_shape=(
                jax.ShapeDtypeStruct((num_cores, 1), jnp.float32),
                jax.ShapeDtypeStruct((num_cores, 1), jnp.float32),
            ),
            grid_spec=pltpu.PrefetchScalarGridSpec(
                num_scalar_prefetch=0,
                grid=(num_cores, rb_per_core, nc),
                in_specs=[
                    pl.BlockSpec((tr, tc), in_map),
                    pl.BlockSpec((tr, tc), in_map),
                ],
                out_specs=(
                    pl.BlockSpec((1, 1), lambda c, i, j: (c, 0),
                                 memory_space=pltpu.SMEM),
                    pl.BlockSpec((1, 1), lambda c, i, j: (c, 0),
                                 memory_space=pltpu.SMEM),
                ),
                scratch_shapes=[
                    pltpu.VMEM((ar, tc), jnp.float32),
                    pltpu.VMEM((ar, tc), jnp.float32),
                ],
            ),
            compiler_params=pltpu.CompilerParams(
                dimension_semantics=("parallel", "arbitrary", "arbitrary")),
            cost_estimate=cost,
        )(predictions, label_matrix)
        abs_total = jnp.sum(abs_parts)
        cnt_total = jnp.sum(cnt_parts)

    # torch: "if num_valid_pairs > 0 ... else 0.0" -> data-dependent select.
    return jnp.where(cnt_total > 0, abs_total / jnp.maximum(cnt_total, 1.0), 0.0)


if __name__ == "__main__":
    def ref_loss(preds, labels):
        mask = (labels != -1.0).astype(jnp.float32)
        nvp = jnp.sum(mask)
        return jnp.where(
            nvp > 0,
            jnp.sum(jnp.abs(preds * mask - labels * mask)) / jnp.maximum(nvp, 1.0),
            0.0,
        )

    num_words = 16
    key = jax.random.PRNGKey(0)
    k1, k2, k3, k4, k5, k6 = jax.random.split(key, 6)

    predictions = jax.random.uniform(k1, (num_words, num_words), jnp.float32) * 5.0
    true_dist = jax.random.uniform(k2, (num_words, num_words), jnp.float32) * 5.0
    invalid = jax.random.uniform(k3, (num_words, num_words)) < 0.25
    label_matrix = jnp.where(invalid, -1.0, true_dist)

    # Fast (single-block) path.
    loss = jax.block_until_ready(l1_distance_loss(predictions, label_matrix))
    ref = ref_loss(predictions, label_matrix)
    assert jnp.allclose(loss, ref, rtol=1e-6, atol=1e-6), (loss, ref)

    # All entries invalid -> exactly 0.0.
    loss_zero = jax.block_until_ready(
        l1_distance_loss(predictions, jnp.full_like(label_matrix, -1.0)))
    assert float(loss_zero) == 0.0

    # Tiled path, forced at a small shape (ragged boundary tiles on both axes,
    # plus a clamped duplicate row-block if the chip has 2 TensorCores).
    n2, m2 = 72, 260
    p2 = jax.random.uniform(k4, (n2, m2), jnp.float32) * 3.0
    t2 = jax.random.uniform(k5, (n2, m2), jnp.float32) * 3.0
    l2 = jnp.where(jax.random.uniform(k6, (n2, m2)) < 0.3, -1.0, t2)
    loss2 = jax.block_until_ready(
        l1_distance_loss(p2, l2, row_tile=16, col_tile=128, small_path_elems=0))
    ref2 = ref_loss(p2, l2)
    assert jnp.allclose(loss2, ref2, rtol=1e-5, atol=1e-6), (loss2, ref2)

    print("KERNEL_OK")
</pallas_src>

<mosaic_0001>
module attributes {stable_mosaic.version = 11 : i64} {
  func.func @_l1_small_kernel(%arg0: i32, %arg1: memref<16x16xf32, #tpu.memory_space<vmem>>, %arg2: memref<16x16xf32, #tpu.memory_space<vmem>>, %arg3: memref<1x1xf32, #tpu.memory_space<smem>>, %arg4: memref<1x1xf32, #tpu.memory_space<smem>>) attributes {dimension_semantics = [#tpu.dimension_semantics<arbitrary>], iteration_bounds = array<i64: 1>, scalar_prefetch = 0 : i64, scratch_operands = 0 : i64, tpu.core_type = #tpu.core_type<tc>, window_params = [{pipeline_mode = #tpu.pipeline_mode<synchronous>, transform_indices = @transform_0, window_bounds = array<i64: 16, 16>}, {pipeline_mode = #tpu.pipeline_mode<synchronous>, transform_indices = @transform_1, window_bounds = array<i64: 16, 16>}, {transform_indices = @transform_2, window_bounds = array<i64: 1, 1>}, {transform_indices = @transform_3, window_bounds = array<i64: 1, 1>}]} {
    %c0 = arith.constant 0 : index
    %c0_0 = arith.constant 0 : index
    %0 = vector.load %arg1[%c0, %c0_0] : memref<16x16xf32, #tpu.memory_space<vmem>>, vector<16x16xf32>
    %c0_1 = arith.constant 0 : index
    %c0_2 = arith.constant 0 : index
    %1 = vector.load %arg2[%c0_1, %c0_2] : memref<16x16xf32, #tpu.memory_space<vmem>>, vector<16x16xf32>
    %cst = arith.constant -1.000000e+00 : f32
    %2 = vector.broadcast %cst : f32 to vector<16x16xf32>
    %3 = arith.cmpf one, %1, %2 : vector<16x16xf32>
    %4 = arith.extui %3 : vector<16x16xi1> to vector<16x16xi32>
    %5 = arith.sitofp %4 : vector<16x16xi32> to vector<16x16xf32>
    %6 = arith.subf %0, %1 : vector<16x16xf32>
    %7 = math.absf %6 : vector<16x16xf32>
    %8 = arith.mulf %7, %5 : vector<16x16xf32>
    %9 = vector.shape_cast %8 : vector<16x16xf32> to vector<1x16x16xf32>
    %cst_3 = arith.constant dense<0.000000e+00> : vector<1xf32>
    %10 = vector.multi_reduction <add>, %9, %cst_3 [1, 2] : vector<1x16x16xf32> to vector<1xf32>
    %11 = vector.shape_cast %10 : vector<1xf32> to vector<1x1x1xf32>
    %12 = vector.extract %11[0, 0, 0] : f32 from vector<1x1x1xf32>
    %c0_4 = arith.constant 0 : index
    %c0_5 = arith.constant 0 : index
    %13 = memref.load %arg3[%c0_4, %c0_5] : memref<1x1xf32, #tpu.memory_space<smem>>
    memref.store %12, %arg3[%c0_4, %c0_5] : memref<1x1xf32, #tpu.memory_space<smem>>
    %14 = vector.shape_cast %5 : vector<16x16xf32> to vector<1x16x16xf32>
    %cst_6 = arith.constant dense<0.000000e+00> : vector<1xf32>
    %15 = vector.multi_reduction <add>, %14, %cst_6 [1, 2] : vector<1x16x16xf32> to vector<1xf32>
    %16 = vector.shape_cast %15 : vector<1xf32> to vector<1x1x1xf32>
    %17 = vector.extract %16[0, 0, 0] : f32 from vector<1x1x1xf32>
    %c0_7 = arith.constant 0 : index
    %c0_8 = arith.constant 0 : index
    %18 = memref.load %arg4[%c0_7, %c0_8] : memref<1x1xf32, #tpu.memory_space<smem>>
    memref.store %17, %arg4[%c0_7, %c0_8] : memref<1x1xf32, #tpu.memory_space<smem>>
    return
  }
  func.func @transform_0(%arg0: i32) -> (i32, i32) {
    %c0_i32 = arith.constant 0 : i32
    %c0_i32_0 = arith.constant 0 : i32
    %c0_i32_1 = arith.constant 0 : i32
    return %c0_i32, %c0_i32_0 : i32, i32
  }
  func.func @transform_1(%arg0: i32) -> (i32, i32) {
    %c0_i32 = arith.constant 0 : i32
    %c0_i32_0 = arith.constant 0 : i32
    %c0_i32_1 = arith.constant 0 : i32
    return %c0_i32, %c0_i32_0 : i32, i32
  }
  func.func @transform_2(%arg0: i32) -> (i32, i32) {
    %c0_i32 = arith.constant 0 : i32
    %c0_i32_0 = arith.constant 0 : i32
    %c0_i32_1 = arith.constant 0 : i32
    return %c0_i32, %c0_i32_0 : i32, i32
  }
  func.func @transform_3(%arg0: i32) -> (i32, i32) {
    %c0_i32 = arith.constant 0 : i32
    %c0_i32_0 = arith.constant 0 : i32
    %c0_i32_1 = arith.constant 0 : i32
    return %c0_i32, %c0_i32_0 : i32, i32
  }
}

</mosaic_0001>

<bundles_post_ra>
// kernel: l1_distance_loss.1
= control target key start
LH: loop header
LB: loop body
LE: loop exit
PB: predicated region body
PF: predicated region fallthrough
CT: control target
= control target key end

     0   :  { %9 = vsyncpa [#allocation3], 0  ;;  %s255_s0 = inlined_call_operand.hbm [shape: f32[16,16], index: 0, kind: input, shape index: {}]   ;;  %s256_s1 = inlined_call_operand.hbm [shape: f32[16,16], index: 1, kind: input, shape index: {}]   ;;  %s257_s2 = inlined_call_operand.hbm [shape: f32[1,1], index: 2, kind: output, shape index: {0}]   ;;  %s258_s3 = inlined_call_operand.hbm [shape: f32[1,1], index: 3, kind: output, shape index: {1}]  }
   0x1   :  { %10 = vsyncpa [#allocation6], 0 }
   0x2   :  { %11 = vsyncpa [#allocation4], 0 }
   0x3   :  { %12 = vsyncpa [#allocation9], 0  ;;  %s17_s14 = sshll.u32 %s255_s0, 4  ;;  %s216_s15 = smov [#allocation2]   ;;  %s18_s14 = int_to_ptr.hbm [resolvable:$true] %s17_s14 }
   0x4   :  { %s19_s16 = sshll.u32 %s216_s15, 4  ;;  %s30_s19 = sshll.u32 %s256_s1, 4  ;;  %s20_s16 = int_to_ptr.vmem [resolvable:$true] %s19_s16  ;;  %s31_s19 = int_to_ptr.hbm [resolvable:$true] %s30_s19 }
   0x5   :  { %s217_s20 = smov 128   ;;  %s218_s21 = smov 8  }
   0x6   :  { %25 = dma.hbm_to_vmem [thread:$0]  %s18_s14, 256, %s20_s16, [#allocation3], %s217_s20, %s217_s20, %s218_s21  }
   0x7   :  { %s219_s22 = smov [#allocation5]  }
   0x8   :  { %s32_s23 = sshll.u32 %s219_s22, 4  ;;  %s33_s23 = int_to_ptr.vmem [resolvable:$true] %s32_s23 }
   0x9   :  { %38 = dma.hbm_to_vmem [thread:$0]  %s31_s19, 256, %s33_s23, [#allocation6], %s217_s20, %s217_s20, %s218_s21  }
   0xa   :  { %208 = dma.done.wait [#allocation3], 256  }
   0xb   :  { %209 = vsyncadd [#allocation3], 4294967040 }
   0xc   :  { %210 = dma.done.wait [#allocation6], 256  }
   0xd   :  { %211 = vsyncadd [#allocation6], 4294967040  ;;  %v47_v0 = vld [vmem:[#allocation2] sm:$0xff]  ;;  %v48_v1 = vld [vmem:[#allocation2 + $0x8] sm:$0xff]  ;;  %v220_v5 = vmov 0.0   ;;  %vm63_vm2 = vcmask 130048  }
   0xe   :  { %v49_v2 = vld [vmem:[#allocation5] sm:$0xff]  ;;  %v50_v3 = vld [vmem:[#allocation5 + $0x8] sm:$0xff]  ;;  %s97_s24 = sshll.u32 %s257_s2, 4  ;;  %s221_s26 = smov [#allocation7]   ;;  %s98_s24 = int_to_ptr.hbm [resolvable:$true] %s97_s24 }
   0xf   :  { %vm51_vm0 = vcmp.ne.f32.partialorder %v49_v2, -1.0  ;;  %v57_v4 = vsub.f32 %v47_v0, %v49_v2  ;;  %vm52_vm1 = vcmp.ne.f32.partialorder %v50_v3, -1.0  ;;  %v58_v7 = vsub.f32 %v48_v1, %v50_v3  ;;  %s106_s29 = sshll.u32 %s258_s3, 4  ;;  %s222_s4 = smov [#allocation8]   ;;  %s107_s29 = int_to_ptr.hbm [resolvable:$true] %s106_s29 }
  0x10   :  { %v123_v6 = vsel %vm51_vm0, 1.0, %v220_v5  ;;  %v124_v8 = vsel %vm52_vm1, 1.0, %v220_v5 }
  0x11   :  { %v59_v9 = vand.u32 2147483647, %v57_v4  ;;  %v60_v10 = vand.u32 2147483647, %v58_v7  ;;  %v78_v16 = vsel %vm63_vm2, %v123_v6, 0.0  ;;  %v79_v17 = vsel %vm63_vm2, %v124_v8, 0.0 }
  0x12   :  { %v80_v18 = vadd.f32 %v79_v17, %v78_v16 }
  0x13   :  { %v61_v11 = vmul.f32 %v123_v6, %v59_v9  ;;  %v62_v12 = vmul.f32 %v124_v8, %v60_v10 }
  0x15   :  { %v64_v13 = vsel %vm63_vm2, %v61_v11, 0.0  ;;  %v65_v14 = vsel %vm63_vm2, %v62_v12, 0.0 }
  0x16   :  { %v66_v15 = vadd.f32 %v65_v14, %v64_v13 }
  0x18   :  { %67 = vadd.xlane.f32.xlu0 %v66_v15 }
  0x20   :  { %81 = vadd.xlane.f32.xlu0 %v80_v18 }
  0x8b   :  { %v68_v19 = vpop.xlane.xlu0 %67 }
  0x8c   :  { %v69_v20 = vrot.slane %v68_v19, 4 }
  0x8e   :  { %v70_v21 = vadd.f32 %v69_v20, %v68_v19 }
  0x90   :  { %v71_v22 = vrot.slane %v70_v21, 2 }
  0x92   :  { %v72_v23 = vadd.f32 %v71_v22, %v70_v21 }
  0x93   :  { %v82_v24 = vpop.xlane.xlu0 %81 }
  0x94   :  { %v83_v25 = vrot.slane %v82_v24, 4  ;;  %v73_v26 = vrot.slane %v72_v23, 1 }
  0x96   :  { %v84_v27 = vadd.f32 %v83_v25, %v82_v24  ;;  %v74_v28 = vadd.f32 %v73_v26, %v72_v23 }
  0x98   :  { %v85_v29 = vrot.slane %v84_v27, 2  ;;  %125 = vpush %v74_v28 }
  0x9a   :  { %v86_v30 = vadd.f32 %v85_v29, %v84_v27 }
  0x9c   :  { %v87_v31 = vrot.slane %v86_v30, 1 }
  0x9e   :  { %v88_v32 = vadd.f32 %v87_v31, %v86_v30 }
  0xa0   :  { %127 = vpush %v88_v32 }
  0xc9   :  { %s126_s25 = spop %125 }
  0xca   :  { %77 = sst [smem:[#allocation7]] %s126_s25 }
  0xcb   :  { %100 = dma.smem_to_hbm %s221_s26, 16, %s98_s24, [#allocation4]  }
  0xd1   :  { %s128_s30 = spop %127 }
  0xd2   :  { %91 = sst [smem:[#allocation8]] %s128_s30 }
  0xd3   :  { %109 = dma.smem_to_hbm %s222_s4, 16, %s107_s29, [#allocation9]  }
  0xd4   :  { %212 = dma.done.wait [#allocation4], 16  }
  0xd5   :  { %213 = vsyncadd [#allocation4], 4294967280 }
  0xd6   :  { %214 = dma.done.wait [#allocation9], 16  }
  0xd7   :  { %215 = vsyncadd [#allocation9], 4294967280 }
  0xd8   :  { %118 = sfence }
  0xd9   :  { %119 = vsyncpa [#allocation3], 1 }
  0xda   :  { %120 = vsyncpa [#allocation6], 1 }
  0xdb   :  { %121 = vsyncpa [#allocation4], 1 }
  0xdc   :  { %122 = vsyncpa [#allocation9], 1 }

</bundles_post_ra>
